<compile_context>
chip_gen: v7x
topology: tpu7x:2x2x1
jax: 0.10.0
libtpu: 0.0.40
codegen_flags: <defaults>
</compile_context>

<pallas_src>
import jax
import jax.numpy as jnp
from jax import lax
from jax.experimental import pallas as pl
from jax.experimental.pallas import tpu as pltpu


LANES = 128
ACC_SUBLANES = 8
ROW_ALIGN = 32                    # sublane-tile multiple for f32/bf16/int8
CHUNK_ROWS = 512                  # in-kernel compute chunk (256 KiB f32)
TARGET_BLOCK_BYTES = 4 * 1024 * 1024   # ~4 MiB DMA block per input


def _round_up(x, m):
    return ((x + m - 1) // m) * m


def _num_tensorcores():
    """2 partial accumulators only on 2-TC (v7x-class) chips, else 1."""
    try:
        kind = jax.devices()[0].device_kind.lower()
    except Exception:
        return 1
    return 2 if ("v7" in kind or "7x" in kind) else 1


def _make_recloss_kernel(block_rows, chunk_rows, blocks_per_part,
                         valid_rows, needs_mask):
    n_full_chunks = block_rows // chunk_rows
    tail_rows = block_rows - n_full_chunks * chunk_rows

    def kernel(a_ref, b_ref, out_ref):
        p = pl.program_id(0)
        i = pl.program_id(1)

        @pl.when(i == 0)
        def _():
            out_ref[...] = jnp.zeros_like(out_ref)

        def accumulate_block(masked, start_row):
            def chunk(r0, nrows):
                av = a_ref[pl.ds(r0, nrows), :].astype(jnp.float32)
                bv = b_ref[pl.ds(r0, nrows), :].astype(jnp.float32)
                diff = jnp.abs(av - bv)
                if masked:
                    row_ids = (start_row + r0) + lax.broadcasted_iota(
                        jnp.int32, (nrows, LANES), 0)
                    diff = jnp.where(row_ids < valid_rows, diff, 0.0)
                # Tile-aligned reshape + sum into the resident (8,128) block:
                # pure VPU adds, no cross-lane work in the hot loop.
                out_ref[...] += jnp.sum(
                    diff.reshape(nrows // ACC_SUBLANES, ACC_SUBLANES, LANES),
                    axis=0)

            @pl.loop(0, n_full_chunks)
            def _(c):
                chunk(pl.multiple_of(c * chunk_rows, chunk_rows), chunk_rows)

            if tail_rows > 0:
                chunk(n_full_chunks * chunk_rows, tail_rows)

        if needs_mask:
            # Only the block(s) overhanging the valid rows take the masked
            # path; interior blocks run the unmasked fast path.
            start_row = (p * blocks_per_part + i) * block_rows
            overhangs = start_row + block_rows > valid_rows

            @pl.when(overhangs)
            def _():
                accumulate_block(True, start_row)

            @pl.when(jnp.logical_not(overhangs))
            def _():
                accumulate_block(False, 0)
        else:
            accumulate_block(False, 0)

    return kernel


@jax.jit
def rec_loss(y_true, y_pred):
    """mean(|y_true - y_pred|) computed by a Pallas TPU kernel."""
    assert y_true.shape == y_pred.shape
    n_elems = y_true.size

    # Stream both inputs in their native dtypes (no wrapper-side astype);
    # the cast to f32 happens in-kernel on the VPU.
    a = jnp.ravel(y_true)
    b = jnp.ravel(y_pred)
    a_item = a.dtype.itemsize
    b_item = b.dtype.itemsize

    # Dtype-aware block size: ~4 MiB per input buffer, multiple of CHUNK_ROWS.
    max_itemsize = max(a_item, b_item)
    max_block_rows = max(
        CHUNK_ROWS,
        (TARGET_BLOCK_BYTES // (LANES * max_itemsize)) // CHUNK_ROWS * CHUNK_ROWS)

    rows = pl.cdiv(n_elems, LANES)
    if rows >= max_block_rows:
        block_rows = max_block_rows
        padded_rows = rows              # no row padding; ragged tail masked
    else:
        block_rows = _round_up(rows, ROW_ALIGN)   # single block
        padded_rows = block_rows

    chunk_rows = min(CHUNK_ROWS, block_rows)

    # Only ragged element counts (n % 128 != 0) or small single-block inputs
    # pay a pad copy; zero padding contributes |0 - 0| = 0 to the sum.
    pad = padded_rows * LANES - n_elems
    if pad:
        a = jnp.pad(a, (0, pad))
        b = jnp.pad(b, (0, pad))
    a2 = a.reshape(padded_rows, LANES)
    b2 = b.reshape(padded_rows, LANES)

    num_blocks = pl.cdiv(padded_rows, block_rows)
    num_partials = min(_num_tensorcores(), num_blocks)
    blocks_per_part = pl.cdiv(num_blocks, num_partials)
    covered_rows = num_partials * blocks_per_part * block_rows
    needs_mask = covered_rows > padded_rows

    def in_index_map(p_idx, i_idx):
        blk = p_idx * blocks_per_part + i_idx
        # Clamp overhanging block indices (odd block counts on the 2-TC
        # split) in-bounds; their contribution is zeroed by the in-kernel mask.
        return (jnp.minimum(blk, num_blocks - 1), 0)

    kernel = _make_recloss_kernel(
        block_rows, chunk_rows, blocks_per_part, padded_rows, needs_mask)

    if num_partials > 1:
        # Real 2-TensorCore split on v7x-class chips.
        dim_sem = (pltpu.CORE_PARALLEL, pltpu.ARBITRARY)
    else:
        dim_sem = ("arbitrary", "arbitrary")

    # Double-buffered input blocks + tiny output + headroom for compiler
    # temporaries; floor at 32 MiB (exceeds v5e's 16 MiB scoped default),
    # cap at 48 MiB (headroom inside v7x's 64 MiB physical VMEM).
    vmem_need = (2 * block_rows * LANES * (a_item + b_item)
                 + 2 * num_partials * ACC_SUBLANES * LANES * 4
                 + (8 << 20))
    vmem_limit = int(min(max(vmem_need, 32 << 20), 48 << 20))

    bytes_accessed = (padded_rows * LANES * (a_item + b_item)
                      + num_partials * ACC_SUBLANES * LANES * 4)

    partials = pl.pallas_call(
        kernel,
        out_shape=jax.ShapeDtypeStruct(
            (num_partials * ACC_SUBLANES, LANES), jnp.float32),
        grid_spec=pltpu.PrefetchScalarGridSpec(
            num_scalar_prefetch=0,
            grid=(num_partials, blocks_per_part),
            in_specs=[
                pl.BlockSpec((block_rows, LANES), in_index_map),
                pl.BlockSpec((block_rows, LANES), in_index_map),
            ],
            out_specs=pl.BlockSpec((ACC_SUBLANES, LANES),
                                   lambda p_idx, i_idx: (p_idx, 0)),
        ),
        compiler_params=pltpu.CompilerParams(
            dimension_semantics=dim_sem,
            vmem_limit_bytes=vmem_limit,
        ),
        cost_estimate=pl.CostEstimate(
            flops=3 * n_elems,
            transcendentals=0,
            bytes_accessed=int(bytes_accessed)),
    )(a2, b2)

    # Single cross-lane reduction + normalization on the tiny partial tensor.
    return jnp.sum(partials) / n_elems


if __name__ == "__main__":
    key = jax.random.PRNGKey(0)
    k1, k2, k3, k4 = jax.random.split(key, 4)

    # Small NCHW-like shapes consistent with a reconstruction-loss use case.
    shape = (2, 4, 16, 16)
    y_true = jax.random.normal(k1, shape, dtype=jnp.float32)
    y_pred = jax.random.normal(k2, shape, dtype=jnp.float32)

    loss = jax.block_until_ready(rec_loss(y_true, y_pred))
    ref = jnp.mean(jnp.abs(y_true - y_pred))
    assert jnp.allclose(loss, ref, rtol=1e-5, atol=1e-6), (loss, ref)

    # Ragged element count (not a multiple of 128): exercises the pad path.
    yt2 = jax.random.normal(k3, (3, 5, 7, 11), dtype=jnp.float32)
    yp2 = jax.random.normal(k4, (3, 5, 7, 11), dtype=jnp.float32)
    loss2 = jax.block_until_ready(rec_loss(yt2, yp2))
    ref2 = jnp.mean(jnp.abs(yt2 - yp2))
    assert jnp.allclose(loss2, ref2, rtol=1e-5, atol=1e-6), (loss2, ref2)

    # bf16 inputs: stream from HBM in bf16, accumulate in f32 in-kernel.
    yt3 = y_true.astype(jnp.bfloat16)
    yp3 = y_pred.astype(jnp.bfloat16)
    loss3 = jax.block_until_ready(rec_loss(yt3, yp3))
    ref3 = jnp.mean(jnp.abs(yt3.astype(jnp.float32) - yp3.astype(jnp.float32)))
    assert jnp.allclose(loss3, ref3, rtol=1e-5, atol=1e-6), (loss3, ref3)

    # Mixed dtypes (f32 target, bf16 prediction): no wrapper-side cast, both
    # stream natively and are upcast to f32 inside the kernel.
    loss4 = jax.block_until_ready(rec_loss(y_true, yp3))
    ref4 = jnp.mean(jnp.abs(y_true - yp3.astype(jnp.float32)))
    assert jnp.allclose(loss4, ref4, rtol=1e-5, atol=1e-6), (loss4, ref4)

    print("KERNEL_OK")
</pallas_src>

<mosaic_0001>
module attributes {stable_mosaic.version = 11 : i64} {
  func.func @kernel(%arg0: i32, %arg1: i32, %arg2: memref<32x128xf32, #tpu.memory_space<vmem>>, %arg3: memref<32x128xf32, #tpu.memory_space<vmem>>, %arg4: memref<8x128xf32, #tpu.memory_space<vmem>>) attributes {dimension_semantics = [#tpu.dimension_semantics<arbitrary>, #tpu.dimension_semantics<arbitrary>], iteration_bounds = array<i64: 1, 1>, scalar_prefetch = 0 : i64, scratch_operands = 0 : i64, tpu.core_type = #tpu.core_type<tc>, window_params = [{transform_indices = @transform_0, window_bounds = array<i64: 32, 128>}, {transform_indices = @transform_1, window_bounds = array<i64: 32, 128>}, {transform_indices = @transform_2, window_bounds = array<i64: 8, 128>}]} {
    %c0_i32 = arith.constant 0 : i32
    %0 = arith.cmpi eq, %arg1, %c0_i32 : i32
    %1 = arith.extui %0 : i1 to i32
    %c0_i32_0 = arith.constant 0 : i32
    %2 = arith.cmpi ne, %1, %c0_i32_0 : i32
    scf.if %2 {
      %cst_9 = arith.constant 0.000000e+00 : f32
      %18 = vector.broadcast %cst_9 : f32 to vector<8x128xf32>
      %c0_10 = arith.constant 0 : index
      %c0_11 = arith.constant 0 : index
      %19 = vector.load %arg4[%c0_10, %c0_11] : memref<8x128xf32, #tpu.memory_space<vmem>>, vector<8x128xf32>
      tpu.vector_store %arg4[%c0_10, %c0_11], %18 {strides = array<i32>} : memref<8x128xf32, #tpu.memory_space<vmem>>, vector<8x128xf32>,
    } else {
    }
    %c0_i32_1 = arith.constant 0 : i32
    %c1_i32 = arith.constant 1 : i32
    %3 = arith.muli %c0_i32_1, %c1_i32 : i32
    %c0_i32_2 = arith.constant 0 : i32
    %4 = arith.addi %c0_i32_2, %3 : i32
    %c32_i32 = arith.constant 32 : i32
    %5 = arith.muli %4, %c32_i32 : i32
    %6 = tpu.assume_multiple %5, 32 : i32
    %7 = arith.index_cast %6 : i32 to index
    %c0 = arith.constant 0 : index
    %8 = vector.load %arg2[%7, %c0] : memref<32x128xf32, #tpu.memory_space<vmem>>, vector<32x128xf32>
    %9 = arith.index_cast %6 : i32 to index
    %c0_3 = arith.constant 0 : index
    %10 = vector.load %arg3[%9, %c0_3] : memref<32x128xf32, #tpu.memory_space<vmem>>, vector<32x128xf32>
    %11 = arith.subf %8, %10 : vector<32x128xf32>
    %12 = math.absf %11 : vector<32x128xf32>
    %c0_4 = arith.constant 0 : index
    %c0_5 = arith.constant 0 : index
    %13 = vector.load %arg4[%c0_4, %c0_5] : memref<8x128xf32, #tpu.memory_space<vmem>>, vector<8x128xf32>
    %14 = vector.shape_cast %12 : vector<32x128xf32> to vector<4x8x128xf32>
    %cst = arith.constant dense<0.000000e+00> : vector<8x128xf32>
    %15 = vector.multi_reduction <add>, %14, %cst [0] : vector<4x8x128xf32> to vector<8x128xf32>
    %16 = arith.addf %13, %15 : vector<8x128xf32>
    %c0_6 = arith.constant 0 : index
    %c0_7 = arith.constant 0 : index
    %17 = vector.load %arg4[%c0_6, %c0_7] : memref<8x128xf32, #tpu.memory_space<vmem>>, vector<8x128xf32>
    tpu.vector_store %arg4[%c0_6, %c0_7], %16 {strides = array<i32>} : memref<8x128xf32, #tpu.memory_space<vmem>>, vector<8x128xf32>,
    %c1_i32_8 = arith.constant 1 : i32
    return
  }
  func.func @transform_0(%arg0: i32, %arg1: i32) -> (i32, i32) {
    %c1_i32 = arith.constant 1 : i32
    %0 = arith.muli %arg0, %c1_i32 : i32
    %1 = arith.addi %0, %arg1 : i32
    %c0_i32 = arith.constant 0 : i32
    %2 = arith.minsi %1, %c0_i32 : i32
    %c0_i32_0 = arith.constant 0 : i32
    %c0_i32_1 = arith.constant 0 : i32
    return %2, %c0_i32_0 : i32, i32
  }
  func.func @transform_1(%arg0: i32, %arg1: i32) -> (i32, i32) {
    %c1_i32 = arith.constant 1 : i32
    %0 = arith.muli %arg0, %c1_i32 : i32
    %1 = arith.addi %0, %arg1 : i32
    %c0_i32 = arith.constant 0 : i32
    %2 = arith.minsi %1, %c0_i32 : i32
    %c0_i32_0 = arith.constant 0 : i32
    %c0_i32_1 = arith.constant 0 : i32
    return %2, %c0_i32_0 : i32, i32
  }
  func.func @transform_2(%arg0: i32, %arg1: i32) -> (i32, i32) {
    %c0_i32 = arith.constant 0 : i32
    %c0_i32_0 = arith.constant 0 : i32
    return %arg0, %c0_i32 : i32, i32
  }
}

</mosaic_0001>

<bundles_post_ra>
// kernel: rec_loss.1
= control target key start
LH: loop header
LB: loop body
LE: loop exit
PB: predicated region body
PF: predicated region fallthrough
CT: control target
= control target key end

     0   :  { %s161_s0 = inlined_call_operand.vmem [shape: f32[32,128], index: 0, kind: input, shape index: {}]   ;;  %s162_s1 = inlined_call_operand.vmem [shape: f32[32,128], index: 1, kind: input, shape index: {}]   ;;  %s163_s2 = inlined_call_operand.vmem [shape: f32[8,128], index: 2, kind: output, shape index: {}]  }
   0x1   :  { %v80_v0 = vld [vmem:[%s161_s0] sm:$0xff]  ;;  %v81_v1 = vld [vmem:[%s161_s0 + $0x8] sm:$0xff]  ;;  %v82_v2 = vld [vmem:[%s161_s0 + $0x10] sm:$0xff] }
   0x2   :  { %v83_v3 = vld [vmem:[%s161_s0 + $0x18] sm:$0xff]  ;;  %v84_v4 = vld [vmem:[%s162_s1] sm:$0xff]  ;;  %v85_v5 = vld [vmem:[%s162_s1 + $0x8] sm:$0xff] }
   0x3   :  { %v86_v6 = vld [vmem:[%s162_s1 + $0x10] sm:$0xff]  ;;  %v87_v7 = vld [vmem:[%s162_s1 + $0x18] sm:$0xff]  ;;  %v88_v8 = vsub.f32 %v80_v0, %v84_v4  ;;  %v89_v9 = vsub.f32 %v81_v1, %v85_v5 }
   0x4   :  { %v90_v10 = vsub.f32 %v82_v2, %v86_v6  ;;  %v91_v11 = vsub.f32 %v83_v3, %v87_v7 }
   0x5   :  { %v92_v12 = vand.u32 2147483647, %v88_v8  ;;  %v93_v13 = vand.u32 2147483647, %v89_v9 }
   0x6   :  { %v94_v14 = vand.u32 2147483647, %v90_v10  ;;  %v95_v15 = vand.u32 2147483647, %v91_v11 }
   0x7   :  { %v97_v16 = vadd.f32 %v93_v13, %v92_v12 }
   0x9   :  { %v98_v17 = vadd.f32 %v97_v16, %v94_v14 }
   0xb   :  { %v99_v18 = vadd.f32 %v98_v17, %v95_v15 }
   0xd   :  { %101 = vst [vmem:[%s163_s2] sm:$0xff] %v99_v18 }

</bundles_post_ra>
